<compile_context>
chip_gen: v6e
topology: v6e:2x2x1
jax: 0.10.0
libtpu: 0.0.40
codegen_flags: <defaults>
</compile_context>

<pallas_src>
import jax
import jax.numpy as jnp
from jax.experimental import pallas as pl
from jax.experimental.pallas import tpu as pltpu


def _copy_kernel(x_ref, o_ref):
    # Pure copy: out = x  (the entire forward pass of TheCitadelInterface).
    o_ref[...] = x_ref[...]


_LANE_CANDIDATES = (8192, 4096, 2048, 1024, 512, 256, 128)


def _lane_dense_shape(total):
    """Pick (rows, lane) with lane a multiple of 128 dividing `total`.

    Prefer shapes where rows is also a multiple of 8 (full (8,128) vreg tiles,
    unmasked stores); among those, prefer the widest lane.
    """
    # First pass: require rows % 8 == 0 (fully dense sublanes + lanes).
    for cand in _LANE_CANDIDATES:
        if total % cand == 0 and (total // cand) % 8 == 0:
            return total // cand, cand
    # Second pass: lane-dense only.
    for cand in _LANE_CANDIDATES:
        if total % cand == 0:
            return total // cand, cand
    return None


def _pick_block_rows(rows, max_rows):
    """Largest divisor of `rows` that is <= max_rows, preferring multiples of 8."""
    if rows <= max_rows:
        return rows
    best_any = 1
    best_mult8 = None
    d = 1
    while d <= max_rows:
        if rows % d == 0:
            best_any = d
            if d % 8 == 0:
                best_mult8 = d
        d += 1
    return best_mult8 if best_mult8 is not None else best_any


def citadel_forward(x):
    """Identity forward pass implemented as a Pallas TPU kernel.

    x: any-shape array (the module passes NCHW images). Returns x unchanged.
    """
    orig_shape = x.shape
    total = int(x.size)
    itemsize = jnp.dtype(x.dtype).itemsize

    dense = _lane_dense_shape(total)
    if dense is not None:
        rows, lane = dense
    else:
        # Fallback for totals not divisible by 128: single full-extent block
        # (block dims equal to full array dims are always legal).
        rows, lane = 1, total

    x2 = x.reshape(rows, lane)

    # Row tile: big enough to amortize per-grid-step overhead, capped at
    # ~2 MiB per tile so (in + out) double-buffering (~8 MiB) stays well under
    # the scoped-VMEM default on all of v5e / v6e / v7x.
    bytes_per_row = lane * itemsize
    max_rows = max(1, (2 * 1024 * 1024) // bytes_per_row)
    block_rows = _pick_block_rows(rows, max_rows)
    grid = (rows // block_rows,)

    out2 = pl.pallas_call(
        _copy_kernel,
        out_shape=jax.ShapeDtypeStruct((rows, lane), x.dtype),
        grid=grid,
        in_specs=[pl.BlockSpec((block_rows, lane), lambda i: (i, 0))],
        out_specs=pl.BlockSpec((block_rows, lane), lambda i: (i, 0)),
        input_output_aliases={0: 0},  # output aliases input: identity, no new HBM buffer
        compiler_params=pltpu.CompilerParams(
            dimension_semantics=("parallel",),
        ),
    )(x2)

    return out2.reshape(orig_shape)


def init_params(key, num_primitives=8, primitive_dim=32):
    """Deterministic init of the module's (unused-in-forward) parameters."""
    (emb_key,) = jax.random.split(key, 1)
    primitive_embeddings = jax.random.normal(
        emb_key, (num_primitives, primitive_dim), dtype=jnp.float32
    )
    return {"primitive_embeddings": primitive_embeddings}


if __name__ == "__main__":
    key = jax.random.PRNGKey(0)
    k_x, k_p = jax.random.split(key)

    # Small NCHW input consistent with an image-like module input.
    x = jax.random.normal(k_x, (2, 4, 16, 16), dtype=jnp.float32)

    # Parameters (not used in forward, matching the PyTorch module semantics).
    params = init_params(k_p, num_primitives=8, primitive_dim=32)
    # TODO(synk): solution_abstraction / program-search machinery (VersionTable,
    # Program.parse, search_timeout busy-wait) is symbolic CPU-side logic with
    # no Pallas equivalent; the LanguageModel encoder is unused in forward.

    y = citadel_forward(x)
    y = jax.block_until_ready(y)

    assert y.shape == x.shape and y.dtype == x.dtype
    assert bool(jnp.array_equal(y, x))
    print("KERNEL_OK")
</pallas_src>

<mosaic_0001>
module attributes {stable_mosaic.version = 11 : i64} {
  func.func @_copy_kernel(%arg0: i32, %arg1: memref<8x256xf32, #tpu.memory_space<vmem>>, %arg2: memref<8x256xf32, #tpu.memory_space<vmem>>) attributes {dimension_semantics = [#tpu.dimension_semantics<parallel>], iteration_bounds = array<i64: 1>, scalar_prefetch = 0 : i64, scratch_operands = 0 : i64, tpu.core_type = #tpu.core_type<tc>, window_params = [{transform_indices = @transform_0, window_bounds = array<i64: 8, 256>}, {transform_indices = @transform_1, window_bounds = array<i64: 8, 256>}]} {
    %c0 = arith.constant 0 : index
    %c0_0 = arith.constant 0 : index
    %0 = vector.load %arg1[%c0, %c0_0] : memref<8x256xf32, #tpu.memory_space<vmem>>, vector<8x256xf32>
    %c0_1 = arith.constant 0 : index
    %c0_2 = arith.constant 0 : index
    %1 = vector.load %arg2[%c0_1, %c0_2] : memref<8x256xf32, #tpu.memory_space<vmem>>, vector<8x256xf32>
    tpu.vector_store %arg2[%c0_1, %c0_2], %0 {strides = array<i32>} : memref<8x256xf32, #tpu.memory_space<vmem>>, vector<8x256xf32>,
    return
  }
  func.func @transform_0(%arg0: i32) -> (i32, i32) {
    %c0_i32 = arith.constant 0 : i32
    %c0_i32_0 = arith.constant 0 : i32
    return %arg0, %c0_i32 : i32, i32
  }
  func.func @transform_1(%arg0: i32) -> (i32, i32) {
    %c0_i32 = arith.constant 0 : i32
    %c0_i32_0 = arith.constant 0 : i32
    return %arg0, %c0_i32 : i32, i32
  }
}

</mosaic_0001>

<bundles_post_ra>
// kernel: tpu_custom_call.1
= control target key start
LH: loop header
LB: loop body
LE: loop exit
PB: predicated region body
PF: predicated region fallthrough
CT: control target
= control target key end

     0   :  { %6 = vsyncpa [#allocation3], 0  ;;  %s104_s0 = inlined_call_operand.hbm [shape: f32[8,256], index: 0, kind: input, shape index: {}, may-alias: {0,1}]   ;;  %s105_s1 = inlined_call_operand.hbm [shape: f32[8,256], index: 1, kind: output, shape index: {}, may-alias: {0,1}]  }
   0x1   :  { %7 = vsyncpa [#allocation4], 0  ;;  %s86_s6 = smov [#allocation2]  }
   0x2   :  { %s14_s7 = sshll.u32 %s86_s6, 4  ;;  %s15_s7 = int_to_ptr.vmem [resolvable:$true] %s14_s7 }
   0x3   :  { %s50_s8 = scalar_lea.vmem %s15_s7, 256  ;;  %p55_p1 = scmp.lt.s32.totalorder %s15_s7, %s15_s7 }
   0x4   :  { %p51_p0 = scmp.ne.s32.totalorder %s15_s7, %s50_s8  ;;  %p56_p2 = scmp.lt.s32.totalorder %s50_s8, %s50_s8 }
   0x6   :  { %p57_p3 = por %p56_p2, %p55_p1 }
   0x8   :  { %p58_p4 = pnand %p57_p3, %p51_p0 }
   0xa   :  { %61 = shalt.err (!%p58_p4)
}
   0xb   :  { %17 = dma.hbm_to_vmem [thread:$0]  %s104_s0, 256, %s15_s7, [#allocation3]  }
   0xc   :  { %82 = dma.done.wait [#allocation3], 256  }
   0xd   :  { %83 = vsyncadd [#allocation3], 4294967040  ;;  %s87_s11 = smov [#allocation5]   ;;  %v21_v0 = vld [vmem:[#allocation2] sm:$0xff]  ;;  %v22_v1 = vld [vmem:[#allocation2 + $0x8] sm:$0xff] }
   0xe   :  { %s31_s12 = sshll.u32 %s87_s11, 4  ;;  %23 = vst [vmem:[#allocation5] sm:$0xff] %v21_v0  ;;  %24 = vst [vmem:[#allocation5 + $0x8] sm:$0xff] %v22_v1  ;;  %s32_s12 = int_to_ptr.vmem [resolvable:$true] %s31_s12 }
   0xf   :  { %s62_s13 = scalar_lea.vmem %s32_s12, 256  ;;  %p67_p6 = scmp.lt.s32.totalorder %s32_s12, %s32_s12 }
  0x10   :  { %p63_p5 = scmp.ne.s32.totalorder %s32_s12, %s62_s13  ;;  %p68_p7 = scmp.lt.s32.totalorder %s62_s13, %s62_s13 }
  0x12   :  { %p69_p8 = por %p68_p7, %p67_p6 }
  0x14   :  { %p70_p9 = pnand %p69_p8, %p63_p5 }
  0x16   :  { %73 = shalt.err (!%p70_p9)
}
  0x17   :  { %34 = dma.vmem_to_hbm [thread:$0]  %s32_s12, 256, %s105_s1, [#allocation4]  }
  0x18   :  { %84 = dma.done.wait [#allocation4], 256  }
  0x19   :  { %85 = vsyncadd [#allocation4], 4294967040 }
  0x1a   :  { %38 = vsyncpa [#allocation3], 1 }
  0x1b   :  { %39 = vsyncpa [#allocation4], 1 }

</bundles_post_ra>
